<compile_context>
chip_gen: v7x
topology: tpu7x:2x2x1
jax: 0.10.0
libtpu: 0.0.40
codegen_flags: <defaults>
</compile_context>

<pallas_src>
import jax
import jax.numpy as jnp
from jax.experimental import pallas as pl
from jax.experimental.pallas import tpu as pltpu


def bigram_kernel(tok_ref, table_ref, logits_ref, loss_ref):
    # tok_ref    : (TILE_N, 2) int32   -- [:, 0] = idx, [:, 1] = target (-1 = pad)
    # table_ref  : (V, V)     float32  -- same block every grid step (resident)
    # logits_ref : (TILE_N, V) float32
    # loss_ref   : (1, 8, 128) float32 -- per-tile partial CE sum, broadcast
    tile_n, v = logits_ref.shape

    tok = tok_ref[...]                                         # (TILE_N, 2)
    idx = tok[:, 0:1]                                          # (TILE_N, 1)
    tgt = tok[:, 1:2]                                          # (TILE_N, 1)

    col = jax.lax.broadcasted_iota(jnp.int32, (tile_n, v), 1)  # (TILE_N, V)

    # Embedding lookup as one-hot matmul on the MXU. HIGHEST precision keeps
    # the gathered f32 table rows bit-exact (no bf16 truncation).
    onehot_idx = (col == idx).astype(jnp.float32)              # (TILE_N, V)
    logits = jnp.dot(
        onehot_idx,
        table_ref[...],
        precision=jax.lax.Precision.HIGHEST,
        preferred_element_type=jnp.float32,
    )                                                          # (TILE_N, V)
    logits_ref[...] = logits

    # Per-row cross-entropy: lse - logit[target]. exp/log go to the EUP slot,
    # the row max / sums to the XLU slot.
    m = jnp.max(logits, axis=-1, keepdims=True)                            # (TILE_N, 1)
    lse = m + jnp.log(jnp.sum(jnp.exp(logits - m), axis=-1, keepdims=True))
    tgt_logit = jnp.sum(jnp.where(col == tgt, logits, 0.0),
                        axis=-1, keepdims=True)                            # (TILE_N, 1)

    # Padded rows carry target == -1 -> masked out of the loss.
    valid = (tgt >= 0).astype(jnp.float32)                                 # (TILE_N, 1)
    row_loss = valid * (lse - tgt_logit)                                   # (TILE_N, 1)

    # Reduce within the tile (sublane reduce, XLU) and store the scalar as a
    # lane-dense (8,128) slab -> unmasked vst + dense DMA (no masked stores).
    tile_sum = jnp.sum(row_loss)
    loss_ref[...] = jnp.full((1, 8, 128), tile_sum, dtype=jnp.float32)


def _pick_tile_n(n):
    """Largest power-of-two tile (multiple of 8, capped at 1024) that keeps
    num_tiles >= 2, so (a) the store-bound logits writeback runs near the HBM
    roofline and (b) both v7x TensorCores get work from the parallel axis."""
    n8 = ((n + 7) // 8) * 8
    for cand in (1024, 512, 256, 128, 64, 32, 16, 8):
        if n8 > cand:          # cdiv(n8, cand) >= 2
            return cand
    return 8                   # whole problem fits in one minimum-size tile


def bigram_forward(idx, targets, table):
    """Mirrors BigramLanguageModel.forward:
    targets given  -> (logits of shape (B*T, V), scalar mean CE loss)
    targets = None -> (logits of shape (B, T, V), None)
    """
    B, T = idx.shape
    V = table.shape[0]
    N = B * T

    tile_n = _pick_tile_n(N)
    n_pad = ((N + tile_n - 1) // tile_n) * tile_n
    num_tiles = n_pad // tile_n

    idx_flat = idx.reshape(N).astype(jnp.int32)
    if targets is None:
        tgt_flat = jnp.full((N,), -1, dtype=jnp.int32)
    else:
        tgt_flat = targets.reshape(N).astype(jnp.int32)

    # Fused (idx, target) input; pad idx with 0, targets with -1.
    idx_p = jnp.pad(idx_flat, (0, n_pad - N), constant_values=0)
    tgt_p = jnp.pad(tgt_flat, (0, n_pad - N), constant_values=-1)
    tok = jnp.stack([idx_p, tgt_p], axis=-1)                   # (n_pad, 2) int32

    mxu_passes = 6  # Precision.HIGHEST f32 emulation on the bf16 MXU
    cost = pl.CostEstimate(
        flops=2 * n_pad * V * V * mxu_passes + 6 * n_pad * V,  # matmul + softmax/CE
        transcendentals=n_pad * V + n_pad,                     # exp + log
        bytes_accessed=(n_pad * V * 4                          # logits writeback
                        + V * V * 4                            # table (read once)
                        + n_pad * 2 * 4                        # fused idx/target
                        + num_tiles * 8 * 128 * 4),            # partial-loss slabs
    )

    logits_p, loss_parts = pl.pallas_call(
        bigram_kernel,
        out_shape=(
            jax.ShapeDtypeStruct((n_pad, V), jnp.float32),
            jax.ShapeDtypeStruct((num_tiles, 8, 128), jnp.float32),
        ),
        grid=(num_tiles,),
        in_specs=[
            pl.BlockSpec((tile_n, 2), lambda i: (i, 0)),       # fused idx/target tile
            pl.BlockSpec((V, V), lambda i: (0, 0)),            # table, VMEM-resident
        ],
        out_specs=(
            pl.BlockSpec((tile_n, V), lambda i: (i, 0)),       # logits tile (lane-dense)
            pl.BlockSpec((1, 8, 128), lambda i: (i, 0, 0)),    # per-tile loss sum slab
        ),
        compiler_params=pltpu.CompilerParams(
            dimension_semantics=("parallel",),                 # megacore-shardable
            # vmem_limit_bytes intentionally NOT set: default scoped limit
            # (32 MiB) is ample for this working set on v5e/v6e/v7x and leaves
            # headroom for Mosaic internal scratch (the old 64 MiB == all of
            # v7x's per-core VMEM).
        ),
        cost_estimate=cost,
    )(tok, table)

    logits = logits_p[:N]                                      # (B*T, V)
    if targets is None:
        return logits.reshape(B, T, V), None
    loss = jnp.sum(loss_parts[:, 0, 0]) / N                    # mean over true N only
    return logits, loss


def _reference(idx, targets, table):
    """Pure-JAX reference matching PyTorch semantics."""
    logits = table[idx.reshape(-1)]                            # (B*T, V)
    lse = jax.nn.logsumexp(logits, axis=-1)                    # (B*T,)
    tgt = targets.reshape(-1)
    tgt_logit = jnp.take_along_axis(logits, tgt[:, None], axis=-1)[:, 0]
    loss = jnp.mean(lse - tgt_logit)
    return logits, loss


if __name__ == "__main__":
    vocab_size = 128   # V
    B, T = 2, 8

    key = jax.random.PRNGKey(0)
    k_tab, k_idx, k_tgt = jax.random.split(key, 3)

    # nn.Embedding default init: N(0, 1)
    table = jax.random.normal(k_tab, (vocab_size, vocab_size), dtype=jnp.float32)
    idx = jax.random.randint(k_idx, (B, T), 0, vocab_size, dtype=jnp.int32)
    targets = jax.random.randint(k_tgt, (B, T), 0, vocab_size, dtype=jnp.int32)

    # Training path (targets given): (B*T, V) logits + scalar loss.
    logits, loss = bigram_forward(idx, targets, table)
    logits = jax.block_until_ready(logits)
    loss = jax.block_until_ready(loss)

    ref_logits, ref_loss = _reference(idx, targets, table)
    assert logits.shape == (B * T, vocab_size)
    assert jnp.allclose(logits, ref_logits, atol=1e-5, rtol=1e-5)
    assert jnp.allclose(loss, ref_loss, atol=1e-5, rtol=1e-5)

    # Inference path (targets=None): (B, T, V) logits, loss is None.
    logits_nt, loss_nt = bigram_forward(idx, None, table)
    logits_nt = jax.block_until_ready(logits_nt)
    assert loss_nt is None
    assert logits_nt.shape == (B, T, vocab_size)
    assert jnp.allclose(logits_nt.reshape(B * T, vocab_size), ref_logits,
                        atol=1e-5, rtol=1e-5)

    # TODO(synk): `generate` uses torch.multinomial in a host-side autoregressive
    # loop; not implemented as a kernel since it's not part of the forward hot path.
    print("KERNEL_OK")
</pallas_src>

<mosaic_0001>
module attributes {stable_mosaic.version = 11 : i64} {
  func.func @bigram_kernel(%arg0: i32, %arg1: memref<8x2xi32, #tpu.memory_space<vmem>>, %arg2: memref<128x128xf32, #tpu.memory_space<vmem>>, %arg3: memref<8x128xf32, #tpu.memory_space<vmem>>, %arg4: memref<1x8x128xf32, #tpu.memory_space<vmem>>) attributes {dimension_semantics = [#tpu.dimension_semantics<parallel>], iteration_bounds = array<i64: 2>, scalar_prefetch = 0 : i64, scratch_operands = 0 : i64, tpu.core_type = #tpu.core_type<tc>, window_params = [{transform_indices = @transform_0, window_bounds = array<i64: 8, 2>}, {pipeline_mode = #tpu.pipeline_mode<synchronous>, transform_indices = @transform_1, window_bounds = array<i64: 128, 128>}, {transform_indices = @transform_2, window_bounds = array<i64: 8, 128>}, {transform_indices = @transform_3, window_bounds = array<i64: 1, 8, 128>}]} {
    %c0 = arith.constant 0 : index
    %c0_0 = arith.constant 0 : index
    %0 = vector.load %arg1[%c0, %c0_0] : memref<8x2xi32, #tpu.memory_space<vmem>>, vector<8x2xi32>
    %1 = vector.extract_strided_slice %0 {offsets = [0, 0], sizes = [8, 1], strides = [1, 1]} : vector<8x2xi32> to vector<8x1xi32>
    %2 = vector.extract_strided_slice %0 {offsets = [0, 1], sizes = [8, 1], strides = [1, 1]} : vector<8x2xi32> to vector<8x1xi32>
    %3 = tpu.iota {dimensions = array<i32: 1>} : vector<8x128xi32>
    %4 = vector.broadcast %1 : vector<8x1xi32> to vector<8x128xi32>
    %5 = arith.cmpi eq, %3, %4 : vector<8x128xi32>
    %6 = arith.extui %5 : vector<8x128xi1> to vector<8x128xi32>
    %7 = arith.sitofp %6 : vector<8x128xi32> to vector<8x128xf32>
    %c0_1 = arith.constant 0 : index
    %c0_2 = arith.constant 0 : index
    %8 = vector.load %arg2[%c0_1, %c0_2] : memref<128x128xf32, #tpu.memory_space<vmem>>, vector<128x128xf32>
    %cst = arith.constant dense<0.000000e+00> : vector<8x128xf32>
    %9 = tpu.matmul %7, %8, %cst {dimension_numbers = #tpu.dot_dimension_numbers<[1], [0], [0], [1], [0, 0, 1, 1], [], []>, precision = #tpu.contract_precision<fp32>} : vector<8x128xf32>, vector<128x128xf32>, vector<8x128xf32> -> vector<8x128xf32>
    %c0_3 = arith.constant 0 : index
    %c0_4 = arith.constant 0 : index
    %10 = vector.load %arg3[%c0_3, %c0_4] : memref<8x128xf32, #tpu.memory_space<vmem>>, vector<8x128xf32>
    tpu.vector_store %arg3[%c0_3, %c0_4], %9 {strides = array<i32>} : memref<8x128xf32, #tpu.memory_space<vmem>>, vector<8x128xf32>,
    %cst_5 = arith.constant dense<0xFF800000> : vector<8xf32>
    %11 = vector.multi_reduction <maximumf>, %9, %cst_5 [1] : vector<8x128xf32> to vector<8xf32>
    %12 = vector.shape_cast %11 : vector<8xf32> to vector<8x1xf32>
    %13 = vector.broadcast %12 : vector<8x1xf32> to vector<8x128xf32>
    %14 = arith.subf %9, %13 : vector<8x128xf32>
    %15 = math.exp %14 : vector<8x128xf32>
    %cst_6 = arith.constant dense<0.000000e+00> : vector<8xf32>
    %16 = vector.multi_reduction <add>, %15, %cst_6 [1] : vector<8x128xf32> to vector<8xf32>
    %17 = vector.shape_cast %16 : vector<8xf32> to vector<8x1xf32>
    %18 = math.log %17 : vector<8x1xf32>
    %19 = arith.addf %12, %18 : vector<8x1xf32>
    %20 = vector.broadcast %2 : vector<8x1xi32> to vector<8x128xi32>
    %21 = arith.cmpi eq, %3, %20 : vector<8x128xi32>
    %cst_7 = arith.constant 0.000000e+00 : f32
    %22 = vector.broadcast %cst_7 : f32 to vector<8x128xf32>
    %23 = arith.select %21, %9, %22 : vector<8x128xi1>, vector<8x128xf32>
    %cst_8 = arith.constant dense<0.000000e+00> : vector<8xf32>
    %24 = vector.multi_reduction <add>, %23, %cst_8 [1] : vector<8x128xf32> to vector<8xf32>
    %25 = vector.shape_cast %24 : vector<8xf32> to vector<8x1xf32>
    %c0_i32 = arith.constant 0 : i32
    %26 = vector.broadcast %c0_i32 : i32 to vector<8x1xi32>
    %27 = arith.cmpi sge, %2, %26 : vector<8x1xi32>
    %28 = arith.extui %27 : vector<8x1xi1> to vector<8x1xi32>
    %29 = arith.sitofp %28 : vector<8x1xi32> to vector<8x1xf32>
    %30 = arith.subf %19, %25 : vector<8x1xf32>
    %31 = arith.mulf %29, %30 : vector<8x1xf32>
    %32 = vector.shape_cast %31 : vector<8x1xf32> to vector<1x8x1xf32>
    %cst_9 = arith.constant dense<0.000000e+00> : vector<1xf32>
    %33 = vector.multi_reduction <add>, %32, %cst_9 [1, 2] : vector<1x8x1xf32> to vector<1xf32>
    %34 = vector.shape_cast %33 : vector<1xf32> to vector<1x1x1xf32>
    %35 = vector.extract %34[0, 0, 0] : f32 from vector<1x1x1xf32>
    %36 = vector.broadcast %35 : f32 to vector<1x8x128xf32>
    %c0_10 = arith.constant 0 : index
    %c0_11 = arith.constant 0 : index
    %c0_12 = arith.constant 0 : index
    %37 = vector.load %arg4[%c0_10, %c0_11, %c0_12] : memref<1x8x128xf32, #tpu.memory_space<vmem>>, vector<1x8x128xf32>
    tpu.vector_store %arg4[%c0_10, %c0_11, %c0_12], %36 {strides = array<i32>} : memref<1x8x128xf32, #tpu.memory_space<vmem>>, vector<1x8x128xf32>,
    return
  }
  func.func @transform_0(%arg0: i32) -> (i32, i32) {
    %c0_i32 = arith.constant 0 : i32
    %c0_i32_0 = arith.constant 0 : i32
    return %arg0, %c0_i32 : i32, i32
  }
  func.func @transform_1(%arg0: i32) -> (i32, i32) {
    %c0_i32 = arith.constant 0 : i32
    %c0_i32_0 = arith.constant 0 : i32
    %c0_i32_1 = arith.constant 0 : i32
    return %c0_i32, %c0_i32_0 : i32, i32
  }
  func.func @transform_2(%arg0: i32) -> (i32, i32) {
    %c0_i32 = arith.constant 0 : i32
    %c0_i32_0 = arith.constant 0 : i32
    return %arg0, %c0_i32 : i32, i32
  }
  func.func @transform_3(%arg0: i32) -> (i32, i32, i32) {
    %c0_i32 = arith.constant 0 : i32
    %c0_i32_0 = arith.constant 0 : i32
    %c0_i32_1 = arith.constant 0 : i32
    return %arg0, %c0_i32, %c0_i32_0 : i32, i32, i32
  }
}

</mosaic_0001>

<bundles_post_ra>
// kernel: tpu_custom_call.1
= control target key start
LH: loop header
LB: loop body
LE: loop exit
PB: predicated region body
PF: predicated region fallthrough
CT: control target
= control target key end

     0   :  { %9 = vsyncpa [#allocation3], 0  ;;  %s2252_s0 = inlined_call_operand.vmem [shape: s32[16,2], index: 0, kind: input, shape index: {}]   ;;  %s2253_s1 = inlined_call_operand.hbm [shape: f32[128,128], index: 1, kind: input, shape index: {}]   ;;  %s2254_s2 = inlined_call_operand.hbm [shape: f32[16,128], index: 2, kind: output, shape index: {0}]   ;;  %s2255_s3 = inlined_call_operand.hbm [shape: f32[2,8,128], index: 3, kind: output, shape index: {1}]  }
   0x1   :  { %10 = vsyncpa [#allocation4], 0 }
   0x2   :  { %12 = vsyncpa [#allocation4 + $0x1], 0 }
   0x3   :  { %13 = vsyncpa [#allocation7], 0 }
   0x4   :  { %15 = vsyncpa [#allocation7 + $0x1], 0  ;;  %s1751_s12 = smov 0   ;;  %s1753_s13 = smov 0  }
   0x5   :  { %s1755_s14 = smov 0   ;;  %s1757_s15 = smov 0  }
   0x6 LB: > { %s1772_s16 = sadd.s32 4294967295, %s1717_s15   ;;  %s1033_s17 = sadd.s32 4294967294, %s1717_s15   ;;  %s1717_s15 = sphi %s1757_s15, %s2271_s15   ;;  %s1713_s14 = sphi %s1755_s14, %s2270_s14   ;;  %s1709_s13 = sphi %s1753_s13, %s2269_s13   ;;  %s1705_s12 = sphi %s1751_s12, %s2268_s12  }
   0x7   : > { %s1776_s18 = sadd.s32 1, %s1717_s15   ;;  %s75_s19 = sadd.s32 1, %s1713_s14 }
   0x8   : > { %s72_s20 = ssub.s32 %s1717_s15, %s1776_s18  ;;  %p85_p0 = scmp.ne.s32.totalorder %s1713_s14, %s1709_s13 }
   0x9   : > { %p73_p1 = scmp.eq.s32.totalorder %s72_s20, 0  ;;  %p86_p2 = scmp.eq.s32.totalorder %s1772_s16, 1 }
   0xa   : > { %p91_p3 = scmp.ne.s32.totalorder %s1709_s13, %s1705_s12  ;;  %p92_p4 = scmp.eq.s32.totalorder %s1033_s17, 1 }
   0xb   : > { %s1787_s21 = scalar_select %p73_p1, %s1713_s14, %s75_s19  }
   0xc   : > { %p1789_p5 = por %p86_p2, %p85_p0  ;;  %p1793_p6 = por %p92_p4, %p91_p3 }
   0xd   : > { %p1034_p7 = scmp.ge.s32.totalorder %s1717_s15, 1  ;;  %p125_p8 = scmp.lt.s32.totalorder %s1717_s15, 3 }
   0xe   : > { %s2259_s22 = scalar_select %p1789_p5, 1, 0 }
   0xf   : > { %s2260_s23 = scalar_select %p1793_p6, 1, 0 }
  0x10   : > { %p2256_p9 = scmp.eq.s32.totalorder %s1772_s16, 0  ;;  %p1800_p10 = pnand %p1034_p7, %p125_p8 }
  0x11   : > { %s1719_s25 = smov [#allocation2]   ;;  %s1591_s30 = scalar_lea.hbm %s2253_s1, 2048 }
  0x12   : > { %s2261_s24 = scalar_select %p1800_p10, 1, 0 }
  0x13   : > { %s137_s26 = sshll.u32 %s1719_s25, 4  ;;  %p1528_p11 = pneg %p1800_p10  ;;  %s138_s26 = int_to_ptr.vmem [resolvable:$true] %s137_s26 }
  0x14   : > { %p1592_p13 = scmp.ne.s32.totalorder %s2253_s1, %s1591_s30  ;;  %p1598_p3 = scmp.lt.u32.totalorder %s1591_s30, %s2253_s1 }
  0x15   : > { %p1808_p12 = pnand %p2256_p9, %p1528_p11 }
  0x17   : > { %p1593_p0 = pneg %p1808_p12 }
  0x19   : > { %p1594_p1 = pnand %p1593_p0, %p1592_p13 }
  0x1b   : > { %p1595_p2 = pneg %p1594_p1 }
  0x1d   : > { %p1600_p4 = pnand %p1598_p3, %p1595_p2 }
  0x1f   : > { %1603 = shalt.err (!%p1600_p4)
}
  0x20   : > { %s1604_s8 = scalar_lea.vmem %s138_s26, 2048  ;;  %p1612_p9 = scmp.lt.s32.totalorder %s138_s26, %s138_s26 }
  0x21   : > { %p1605_p7 = scmp.ne.s32.totalorder %s138_s26, %s1604_s8  ;;  %p1613_p6 = scmp.lt.s32.totalorder %s1604_s8, %s1604_s8 }
  0x23   : > { %p1607_p8 = pnand %p1605_p7, %p1593_p0  ;;  %p1614_p5 = por %p1613_p6, %p1612_p9 }
  0x25   : > { %p1608_p11 = pneg %p1607_p8 }
  0x27   : > { %p1615_p10 = pnand %p1614_p5, %p1608_p11 }
  0x29   : > { %1618 = shalt.err (!%p1615_p10)
}
  0x2a   : > { %s1720_s9 = smov 128   ;;  %s1721_s10 = smov 8  }
  0x2b   : > { %1531 = dma.hbm_to_vmem [thread:$0]  (!%p1808_p12), %s2253_s1, 2048, %s138_s26, [#allocation3], %s1720_s9, %s1720_s9, %s1721_s10  }
  0x2c   : > { %p2263_p13 = scmp.ne.s32.totalorder %s2261_s24, 0 }
  0x2d   : > { %p2264_p1 = scmp.eq.s32.totalorder (!%p2263_p13), %s1772_s16, 0 }
  0x2e   : > { %160 = sbr.rel (%p2263_p13) target bundleno = 1130 (0x46a), region = 28 }
  0x35   : > { %1692 = dma.done.wait (%p2264_p1), [#allocation3], 2048   ;;  %p2265_p0 = pmov %p2264_p1 }
  0x36   : > { %p188_p5 = scmp.lt.s32.totalorder %s1772_s16, 1  ;;  %v1722_v0 = vmov 0   ;;  %v1723_v1 = vmov 0.0|0.0   ;;  %v201_v3 = vld [vmem:[#allocation2] sm:$0xff]  ;;  %v202_v4 = vld [vmem:[#allocation2 + $0x8] sm:$0xff]  ;;  %v203_v7 = vld [vmem:[#allocation2 + $0x10] sm:$0xff] }
  0x37   : > { %1694 = vsyncadd (%p2265_p0), [#allocation3], 4294965248  ;;  %1584 = vset.pattern.permute.xlu0 %v1722_v0  ;;  %1437 = vmatprep.subr.bf16.mxu0 %v1723_v1  ;;  %v218_v5 = vand.u32 4294901760, %v201_v3  ;;  %v221_v6 = vand.u32 4294901760, %v202_v4  ;;  %v204_v8 = vld [vmem:[#allocation2 + $0x18] sm:$0xff]  ;;  %v205_v9 = vld [vmem:[#allocation2 + $0x20] sm:$0xff] }
  0x38   : > { %s189_s19 = scalar_select %p188_p5, %s1772_s16, 1  ;;  %1365 = vmatprep.subr.bf16.mxu1 %v1723_v1  ;;  %v224_v10 = vand.u32 4294901760, %v203_v7  ;;  %v227_v11 = vand.u32 4294901760, %v204_v8  ;;  %v206_v12 = vld [vmem:[#allocation2 + $0x28] sm:$0xff]  ;;  %v230_v13 = vand.u32 4294901760, %v205_v9  ;;  %v207_v14 = vld [vmem:[#allocation2 + $0x30] sm:$0xff] }
  0x39   : > { %v208_v15 = vld [vmem:[#allocation2 + $0x38] sm:$0xff]  ;;  %v1844_v16 = vpack.c.bf16 %v221_v6, %v218_v5  ;;  %v1846_v17 = vsub.f32 %v201_v3, %v218_v5  ;;  %v1848_v18 = vsub.f32 %v202_v4, %v221_v6  ;;  %v233_v19 = vand.u32 4294901760, %v206_v12  ;;  %v1850_v20 = vld [vmem:[#allocation2 + $0x40] sm:$0xff]  ;;  %v1852_v21 = vld [vmem:[#allocation2 + $0x48] sm:$0xff]  ;;  %s2164_s27 = sand.u32 1, %s1709_s13   ;;  %s1728_s30 = smov 127  }
  0x3a   : > { %s1041_s20 = sshll.u32 %s189_s19, 3  ;;  %v1854_v22 = vld [vmem:[#allocation2 + $0x50] sm:$0xff]  ;;  %v1856_v23 = vsub.f32 %v203_v7, %v224_v10  ;;  %v1858_v24 = vsub.f32 %v204_v8, %v227_v11  ;;  %v1860_v25 = vsub.f32 %v205_v9, %v230_v13  ;;  %v1862_v26 = vld [vmem:[#allocation2 + $0x58] sm:$0xff]  ;;  %v1864_v27 = vld [vmem:[#allocation2 + $0x60] sm:$0xff]  ;;  %v1868_v28 = vpack.c.bf16 %v227_v11, %v224_v10  ;;  %s1039_s28 = sshll.u32 %s2164_s27, 3 }
  0x3b   : > { %s191_s26 = scalar_lea.vmem %s2252_s0, %s1041_s20  ;;  %1439 = vmatpush3.bf16.msra.mxu0 %v1844_v16  ;;  %1367 = vmatpush3.bf16.msra.mxu1 %v1844_v16  ;;  %v1870_v29 = vsub.f32 %v206_v12, %v233_v19  ;;  %v236_v30 = vand.u32 4294901760, %v207_v14  ;;  %v239_v31 = vand.u32 4294901760, %v208_v15  ;;  %v242_v32 = vand.u32 4294901760, %v1850_v20  ;;  %v1877_v35 = vld [vmem:[#allocation2 + $0x68] sm:$0xff]  ;;  %v1885_v40 = vld [vmem:[#allocation2 + $0x70] sm:$0xff]  ;;  %v1887_v41 = vld [vmem:[#allocation2 + $0x78] sm:$0xff] }
  0x3c   : > { %v1841_v2 = vld [vmem:[%s191_s26] sm:$0xff]  ;;  %1440 = vmatprep.subr.bf16.mxu0 %v1723_v1  ;;  %1368 = vmatprep.subr.bf16.mxu1 %v1723_v1  ;;  %v245_v33 = vand.u32 4294901760, %v1852_v21  ;;  %v248_v34 = vand.u32 4294901760, %v1854_v22  ;;  %v251_v38 = vand.u32 4294901760, %v1862_v26  ;;  %v254_v39 = vand.u32 4294901760, %v1864_v27  ;;  %s2170_s29 = scalar_lea.vmem [#allocation5], %s1039_s28 }
  0x3d   : > { %196 = vperm.xlu0 %1584, %v1841_v2   ;;  %v1879_v36 = vsub.f32 %v207_v14, %v236_v30  ;;  %v1881_v37 = vsub.f32 %v208_v15, %v239_v31  ;;  %v1889_v42 = vpack.c.bf16 %v233_v19, %v230_v13  ;;  %v1892_v43 = vsub.f32 %v1850_v20, %v242_v32  ;;  %s1049_s4 = sshll.u32 %s1772_s16, 7  ;;  %s917_s8 = sshll.u32 %s2170_s29, 4  ;;  %s918_s8 = int_to_ptr.vmem [resolvable:$true] %s917_s8 }
  0x3e   : > { %v1895_v44 = vsub.f32 %v1852_v21, %v245_v33  ;;  %v1902_v45 = vsub.f32 %v1854_v22, %v248_v34  ;;  %v1907_v46 = vsub.f32 %v1862_v26, %v251_v38  ;;  %v257_v47 = vand.u32 4294901760, %v1877_v35  ;;  %s2181_s7 = scalar_lea.hbm %s2254_s2, %s1049_s4  ;;  %s899_s9 = scalar_lea.sflag [#allocation4], %s2164_s27 }
  0x3f   : > { %1442 = vmatpush3.bf16.msra.mxu0 %v1868_v28  ;;  %1370 = vmatpush3.bf16.msra.mxu1 %v1868_v28  ;;  %v1913_v48 = vsub.f32 %v1864_v27, %v254_v39  ;;  %v260_v49 = vand.u32 4294901760, %v1885_v40  ;;  %v263_v50 = vand.u32 4294901760, %v1887_v41  ;;  %v311_v51 = vand.u32 4294901760, %v1846_v17  ;;  %s1619_s10 = scalar_lea.vmem %s918_s8, 128  ;;  %p2266_p9 = scmp.ne.s32.totalorder %s2259_s22, 0 }
  0x40   : > { %1443 = vmatprep.subr.bf16.mxu0 %v1723_v1  ;;  %1371 = vmatprep.subr.bf16.mxu1 %v1723_v1  ;;  %v1923_v52 = vsub.f32 %v1877_v35, %v257_v47  ;;  %vm1724_vm0 = vmmov 0   ;;  %v1725_v53 = vmov 0.0   ;;  %v318_v54 = vand.u32 4294901760, %v1848_v18  ;;  %p1620_p6 = scmp.ne.s32.totalorder %s918_s8, %s1619_s10  ;;  %s1729_s11 = smov [#allocation5]  }
  0x41   : > { %1292 = vmatprep.mubr.msk.f32.mxu0 %vm1724_vm0, %v1725_v53  ;;  %1187 = vmatprep.mubr.msk.f32.mxu1 %vm1724_vm0, %v1725_v53  ;;  %v325_v55 = vand.u32 4294901760, %v1856_v23  ;;  %v1931_v56 = vpack.c.bf16 %v239_v31, %v236_v30  ;;  %v1936_v57 = vsub.f32 %v1885_v40, %v260_v49  ;;  %v1941_v58 = vsub.f32 %v1887_v41, %v263_v50  ;;  %s1623_s17 = sshll.u32 %s1729_s11, 4  ;;  %s1624_s17 = int_to_ptr.vmem [resolvable:$false] %s1623_s17 }
  0x42   : > { %v312_v59 = vsub.f32 %v1846_v17, %v311_v51  ;;  %v1946_v60 = vpack.c.bf16 %v318_v54, %v311_v51  ;;  %v319_v61 = vsub.f32 %v1848_v18, %v318_v54  ;;  %v332_v62 = vand.u32 4294901760, %v1858_v24  ;;  %p1621_p10 = pnand %p1620_p6, %p2266_p9  ;;  %s1625_s19 = scalar_lea.vmem %s1624_s17, 256 }
  0x43   : > { %1445 = vmatpush3.bf16.msra.mxu0 %v1889_v42  ;;  %1373 = vmatpush3.bf16.msra.mxu1 %v1889_v42  ;;  %v326_v63 = vsub.f32 %v1856_v23, %v325_v55  ;;  %v339_v3 = vand.u32 4294901760, %v1860_v25  ;;  %v346_v4 = vand.u32 4294901760, %v1870_v29  ;;  %v353_v12 = vand.u32 4294901760, %v1879_v36  ;;  %p1626_p2 = scmp.lt.s32.totalorder %s918_s8, %s1624_s17  ;;  %p1627_p3 = scmp.lt.s32.totalorder %s1625_s19, %s1619_s10 }
  0x44   : > { %1446 = vmatprep.subr.bf16.mxu0 %v1723_v1  ;;  %1374 = vmatprep.subr.bf16.mxu1 %v1723_v1  ;;  %v313_v0 = vand.u32 4294901760, %v312_v59  ;;  %v320_v5 = vand.u32 4294901760, %v319_v61  ;;  %v1955_v6 = vpack.c.bf16 %v332_v62, %v325_v55  ;;  %v333_v8 = vsub.f32 %v1858_v24, %v332_v62  ;;  %p1622_p12 = pneg %p1621_p10 }
  0x45   : > { %v327_v7 = vand.u32 4294901760, %v326_v63  ;;  %v1958_v9 = vpack.c.bf16 %v346_v4, %v339_v3  ;;  %v340_v10 = vsub.f32 %v1860_v25, %v339_v3  ;;  %v347_v11 = vsub.f32 %v1870_v29, %v346_v4  ;;  %p1628_p4 = por %p1627_p3, %p1626_p2 }
  0x46   : > { %v1965_v13 = vpack.c.bf16 %v245_v33, %v242_v32  ;;  %v1967_v14 = vpack.c.bf16 %v320_v5, %v313_v0  ;;  %v334_v15 = vand.u32 4294901760, %v333_v8  ;;  %v360_v19 = vand.u32 4294901760, %v1881_v37 }
  0x47   : > { %1448 = vmatpush3.bf16.msra.mxu0 %v1931_v56  ;;  %1376 = vmatpush3.bf16.msra.mxu1 %v1931_v56  ;;  %v341_v20 = vand.u32 4294901760, %v340_v10  ;;  %v348_v21 = vand.u32 4294901760, %v347_v11  ;;  %v354_v30 = vsub.f32 %v1879_v36, %v353_v12  ;;  %v367_v55 = vand.u32 4294901760, %v1892_v43  ;;  %p1629_p7 = pnand %p1628_p4, %p1622_p12 }
  0x48   : > { %1449 = vmatprep.subr.bf16.mxu0 %v1723_v1  ;;  %1377 = vmatprep.subr.bf16.mxu1 %v1723_v1  ;;  %v1973_v31 = vpack.c.bf16 %v334_v15, %v327_v7  ;;  %v1975_v51 = vpack.c.bf16 %v360_v19, %v353_v12  ;;  %v361_v32 = vsub.f32 %v1881_v37, %v360_v19  ;;  %v374_v59 = vand.u32 4294901760, %v1895_v44 }
  0x49   : > { %v1978_v33 = vpack.c.bf16 %v348_v21, %v341_v20  ;;  %v355_v54 = vand.u32 4294901760, %v354_v30  ;;  %v1988_v61 = vpack.c.bf16 %v251_v38, %v248_v34  ;;  %v368_v0 = vsub.f32 %v1892_v43, %v367_v55 }
  0x4a   : > { %v362_v62 = vand.u32 4294901760, %v361_v32  ;;  %v1992_v63 = vpack.c.bf16 %v374_v59, %v367_v55  ;;  %v375_v3 = vsub.f32 %v1895_v44, %v374_v59  ;;  %v381_v22 = vand.u32 4294901760, %v1902_v45 }
  0x4b   : > { %1451 = vmatpush3.bf16.msra.mxu0 %v1965_v13  ;;  %1379 = vmatpush3.bf16.msra.mxu1 %v1965_v13  ;;  %v369_v5 = vand.u32 4294901760, %v368_v0  ;;  %v388_v26 = vand.u32 4294901760, %v1907_v46  ;;  %v2006_v34 = vpack.c.bf16 %v257_v47, %v254_v39  ;;  %v395_v15 = vand.u32 4294901760, %v1913_v48 }
  0x4c   : > { %1452 = vmatprep.subr.bf16.mxu0 %v1723_v1  ;;  %1380 = vmatprep.subr.bf16.mxu1 %v1723_v1  ;;  %v1996_v4 = vpack.c.bf16 %v362_v62, %v355_v54  ;;  %v376_v7 = vand.u32 4294901760, %v375_v3  ;;  %v382_v10 = vsub.f32 %v1902_v45, %v381_v22  ;;  %v402_v27 = vand.u32 4294901760, %v1923_v52 }
  0x4d   : > { %v2012_v8 = vpack.c.bf16 %v388_v26, %v381_v22  ;;  %v389_v11 = vsub.f32 %v1907_v46, %v388_v26  ;;  %v2024_v35 = vpack.c.bf16 %v263_v50, %v260_v49  ;;  %v396_v19 = vsub.f32 %v1913_v48, %v395_v15 }
  0x4e   : > { %v2010_v38 = vpack.c.bf16 %v376_v7, %v369_v5  ;;  %v383_v12 = vand.u32 4294901760, %v382_v10  ;;  %v2028_v47 = vpack.c.bf16 %v402_v27, %v395_v15  ;;  %v403_v20 = vsub.f32 %v1923_v52, %v402_v27 }
  0x4f   : > { %1454 = vmatpush3.bf16.msra.mxu0 %v1988_v61  ;;  %1382 = vmatpush3.bf16.msra.mxu1 %v1988_v61  ;;  %v390_v39 = vand.u32 4294901760, %v389_v11  ;;  %v397_v30 = vand.u32 4294901760, %v396_v19  ;;  %v409_v40 = vand.u32 4294901760, %v1936_v57  ;;  %v416_v41 = vand.u32 4294901760, %v1941_v58 }
  0x50   : > { %1455 = vmatprep.subr.bf16.mxu0 %v1723_v1  ;;  %1383 = vmatprep.subr.bf16.mxu1 %v1723_v1  ;;  %v404_v32 = vand.u32 4294901760, %v403_v20  ;;  %v1414_v3 = vpack.c.bf16 %v1848_v18, %v1846_v17  ;;  %v1417_v5 = vpack.c.bf16 %v1858_v24, %v1856_v23  ;;  %v1420_v7 = vpack.c.bf16 %v1870_v29, %v1860_v25 }
  0x51   : > { %v1405_v21 = vpack.c.bf16 %v390_v39, %v383_v12  ;;  %v1483_v50 = vpack.c.bf16 %v416_v41, %v409_v40  ;;  %v410_v54 = vsub.f32 %v1936_v57, %v409_v40  ;;  %v417_v55 = vsub.f32 %v1941_v58, %v416_v41 }
  0x52   : > { %v1408_v49 = vpack.c.bf16 %v404_v32, %v397_v30  ;;  %v1423_v22 = vpack.c.bf16 %v1881_v37, %v1879_v36  ;;  %v1426_v26 = vpack.c.bf16 %v1895_v44, %v1892_v43  ;;  %v1429_v10 = vpack.c.bf16 %v1907_v46, %v1902_v45 }
  0x53   : > { %1457 = vmatpush3.bf16.msra.mxu0 %v2006_v34  ;;  %1385 = vmatpush3.bf16.msra.mxu1 %v2006_v34  ;;  %v411_v59 = vand.u32 4294901760, %v410_v54  ;;  %v418_v62 = vand.u32 4294901760, %v417_v55  ;;  %v1432_v11 = vpack.c.bf16 %v1923_v52, %v1913_v48  ;;  %v1435_v12 = vpack.c.bf16 %v1941_v58, %v1936_v57 }
  0x54   : > { %1458 = vmatprep.subr.bf16.mxu0 %v1723_v1  ;;  %1386 = vmatprep.subr.bf16.mxu1 %v1723_v1  ;;  %v1726_v15 = vmov 1   ;;  %v193_v27 = vlaneseq  ;;  %vm876_vm3 = vcmp.ge.s32.totalorder %v1841_v2, 0  ;;  %vm885_vm4 = vcmask 7168  }
  0x55   : > { %v1411_v0 = vpack.c.bf16 %v418_v62, %v411_v59  ;;  %1585 = vset.pattern.permute.xlu1 %v1726_v15  ;;  %1586 = vset.pattern.permute.xlu0 %v1726_v15  ;;  %v1046_v48 = vsel %vm876_vm3, 1.0, %v1725_v53 }
  0x56   : > { %870 = vperm.xlu1 %1585, %v1841_v2   ;;  %v2057_v39 = vand.u32 127, %v193_v27 }
  0x57   : > { %1460 = vmatpush3.bf16.msra.mxu0 %v2024_v35  ;;  %1388 = vmatpush3.bf16.msra.mxu1 %v2024_v35 }
  0x58   : > { %1461 = vmatprep.subr.bf16.mxu0 %v1723_v1  ;;  %1389 = vmatprep.subr.bf16.mxu1 %v1723_v1 }
  0xbc   : > { %v2059_v19 = vpop.permute.xlu0 %196 }
  0xbd   : > { %vm198_vm1 = vcmp.eq.s32.totalorder %v2057_v39, %v2059_v19 }
  0xbe   : > { %v1042_v20 = vsel %vm198_vm1, 1.0, %v1725_v53 }
  0xbf   : > { %v2067_v30 = vsub.f32 %v1042_v20, %v1042_v20 }
  0xc1   : > { %v300_v32 = vand.u32 4294901760, %v2067_v30 }
  0xc3   : > { %1293 = vmatmul.mubr.f32.vlgmr.msra.gmra.mrb[0].mxu0 %v300_v32  ;;  %v301_v40 = vsub.f32 %v2067_v30, %v300_v32 }
  0xc4   : > { %1463 = vmatpush3.bf16.msra.mxu0 %v1946_v60  ;;  %1327 = vmatprep.mubr.msk.f32.mxu0 %vm1724_vm0, %v1725_v53  ;;  %v1727_v60 = vmov 1.0  }
  0xc5   : > { %1464 = vmatprep.subr.bf16.mxu0 %v1723_v1  ;;  %v302_v41 = vand.u32 4294901760, %v301_v40 }
  0xc7   : > { %1188 = vmatmul.mubr.f32.vlgmr.msra.gmra.mrb[0].mxu1 %v302_v41 }
  0xc8   : > { %1391 = vmatpush3.bf16.msra.mxu1 %v1967_v14  ;;  %1466 = vmatpush3.bf16.msra.mxu0 %v1955_v6 }
  0xc9   : > { %1392 = vmatprep.subr.bf16.mxu1 %v1723_v1  ;;  %1467 = vmatprep.subr.bf16.mxu0 %v1723_v1 }
  0xca   : > { %1222 = vmatprep.mubr.msk.f32.mxu1 %vm1724_vm0, %v1725_v53 }
  0xcc   : > { %1394 = vmatpush3.bf16.msra.mxu1 %v1973_v31  ;;  %1469 = vmatpush3.bf16.msra.mxu0 %v1958_v9 }
  0xcd   : > { %1395 = vmatprep.subr.bf16.mxu1 %v1723_v1  ;;  %1470 = vmatprep.subr.bf16.mxu0 %v1723_v1 }
  0xd0   : > { %1397 = vmatpush3.bf16.msra.mxu1 %v1978_v33  ;;  %1472 = vmatpush3.bf16.msra.mxu0 %v1975_v51 }
  0xd1   : > { %1398 = vmatprep.subr.bf16.mxu1 %v1723_v1  ;;  %1473 = vmatprep.subr.bf16.mxu0 %v1723_v1 }
  0xd4   : > { %1400 = vmatpush3.bf16.msra.mxu1 %v1996_v4  ;;  %1475 = vmatpush3.bf16.msra.mxu0 %v1992_v63 }
  0xd5   : > { %1401 = vmatprep.subr.bf16.mxu1 %v1723_v1  ;;  %1476 = vmatprep.subr.bf16.mxu0 %v1723_v1  ;;  %v871_v23 = vpop.permute.xlu1 %870 }
  0xd6   : > { %vm872_vm2 = vcmp.eq.s32.totalorder %v2057_v39, %v871_v23 }
  0xd8   : > { %1403 = vmatpush3.bf16.msra.mxu1 %v2010_v38  ;;  %1478 = vmatpush3.bf16.msra.mxu0 %v2012_v8 }
  0xd9   : > { %1404 = vmatprep.subr.bf16.mxu1 %v1723_v1  ;;  %1479 = vmatprep.subr.bf16.mxu0 %v1723_v1 }
  0xdc   : > { %1406 = vmatpush3.bf16.msra.mxu1 %v1405_v21  ;;  %1481 = vmatpush3.bf16.msra.mxu0 %v2028_v47 }
  0xdd   : > { %1407 = vmatprep.subr.bf16.mxu1 %v1723_v1  ;;  %1482 = vmatprep.subr.bf16.mxu0 %v1723_v1 }
  0xe0   : > { %1409 = vmatpush3.bf16.msra.mxu1 %v1408_v49  ;;  %1484 = vmatpush3.bf16.msra.mxu0 %v1483_v50 }
  0xe1   : > { %1410 = vmatprep.subr.bf16.mxu1 %v1723_v1  ;;  %1485 = vmatprep.subr.bf16.mxu0 %v1723_v1 }
  0xe3   : > { %1328 = vmatmul.mubr.msk.f32.vlgmr.msra.gmra.mrb[0].mxu0 %vm198_vm1, %v1727_v60 }
  0xe4   : > { %1412 = vmatpush3.bf16.msra.mxu1 %v1411_v0  ;;  %1487 = vmatpush3.bf16.msra.mxu0 %v1844_v16 }
  0xe5   : > { %1413 = vmatprep.subr.bf16.mxu1 %v1723_v1  ;;  %1488 = vmatprep.subr.bf16.mxu0 %v1723_v1 }
  0xe6   : > { %1362 = vmatprep.mubr.msk.f32.mxu0 %vm1724_vm0, %v1725_v53 }
  0xe7   : > { %1223 = vmatmul.mubr.msk.f32.vlgmr.msra.gmra.mrb[0].mxu1 %vm198_vm1, %v1727_v60 }
  0xe8   : > { %1415 = vmatpush3.bf16.msra.mxu1 %v1414_v3  ;;  %1490 = vmatpush3.bf16.msra.mxu0 %v1868_v28 }
  0xe9   : > { %1416 = vmatprep.subr.bf16.mxu1 %v1723_v1  ;;  %1491 = vmatprep.subr.bf16.mxu0 %v1723_v1 }
  0xea   : > { %1257 = vmatprep.mubr.msk.f32.mxu1 %vm1724_vm0, %v1725_v53 }
  0xec   : > { %1418 = vmatpush3.bf16.msra.mxu1 %v1417_v5  ;;  %1493 = vmatpush3.bf16.msra.mxu0 %v1889_v42 }
  0xed   : > { %1419 = vmatprep.subr.bf16.mxu1 %v1723_v1  ;;  %1494 = vmatprep.subr.bf16.mxu0 %v1723_v1 }
  0xf0   : > { %1421 = vmatpush3.bf16.msra.mxu1 %v1420_v7  ;;  %1496 = vmatpush3.bf16.msra.mxu0 %v1931_v56 }
  0xf1   : > { %1422 = vmatprep.subr.bf16.mxu1 %v1723_v1  ;;  %1497 = vmatprep.subr.bf16.mxu0 %v1723_v1 }
  0xf4   : > { %1424 = vmatpush3.bf16.msra.mxu1 %v1423_v22  ;;  %1499 = vmatpush3.bf16.msra.mxu0 %v1965_v13 }
  0xf5   : > { %1425 = vmatprep.subr.bf16.mxu1 %v1723_v1  ;;  %1500 = vmatprep.subr.bf16.mxu0 %v1723_v1 }
  0xf8   : > { %1427 = vmatpush3.bf16.msra.mxu1 %v1426_v26  ;;  %1502 = vmatpush3.bf16.msra.mxu0 %v1988_v61 }
  0xf9   : > { %1428 = vmatprep.subr.bf16.mxu1 %v1723_v1  ;;  %1503 = vmatprep.subr.bf16.mxu0 %v1723_v1 }
  0xfc   : > { %1430 = vmatpush3.bf16.msra.mxu1 %v1429_v10  ;;  %1505 = vmatpush3.bf16.msra.mxu0 %v2006_v34 }
  0xfd   : > { %1431 = vmatprep.subr.bf16.mxu1 %v1723_v1  ;;  %1506 = vmatprep.subr.bf16.mxu0 %v1723_v1 }
 0x100   : > { %1433 = vmatpush3.bf16.msra.mxu1 %v1432_v11  ;;  %1508 = vmatpush3.bf16.msra.mxu0 %v2024_v35 }
 0x101   : > { %1434 = vmatprep.subr.bf16.mxu1 %v1723_v1 }
 0x103   : > { %1363 = vmatmul.mubr.msk.f32.vlgmr.msra.gmra.mrb[0].mxu0 %vm198_vm1, %v1727_v60 }
 0x104   : > { %1436 = vmatpush3.bf16.msra.mxu1 %v1435_v12 }
 0x107   : > { %1258 = vmatmul.mubr.f32.vlgmr.msra.gmra.mrb[0].mxu1 %v2067_v30 }
 0x1d6   : > { %v854_v16 = vpop.f32.mrb[0].mxu0 }
 0x1d7   : > { %v1364_v17 = vpop.f32.mrb[1].mxu0 }
 0x1da   : > { %v559_v18 = vpop.f32.mrb[0].mxu1 }
 0x1db   : > { %v1509_v1 = vadd.f32 %v854_v16, %v559_v18  ;;  %v1259_v24 = vpop.f32.mrb[1].mxu1 }
 0x1dd   : > { %859 = vmax.xlane.f32.xlu0 %v1509_v1  ;;  %858 = vst [vmem:[%s2170_s29] sm:$0xff] %v1509_v1  ;;  %v873_v25 = vsel %vm872_vm2, %v1509_v1, 0.0 }
 0x1e1   : > { %874 = vadd.xlane.f32.xlu0 %v873_v25 }
 0x26a   : > { %v860_v28 = vpop.xlane.xlu0 %859 }
 0x26b   : > { %v861_v29 = vsub.f32 %v1509_v1, %v860_v28 }
 0x26d   : > { %v862_v36 = vmul.f32 1.442695, %v861_v29 }
 0x26e   : > { %v875_v46 = vpop.xlane.xlu0 %874 }
 0x26f   : > { %1587 = vpow2.f32 %v862_v36 }
 0x279   : > { %v1588_v37 = vpop.eup %1587 }
 0x27a   : > { %864 = vadd.xlane.f32.xlu1 %v1588_v37 }
 0x307   : > { %v865_v42 = vpop.xlane.xlu1 %864 }
 0x308   : > { %1589 = vlog2.f32 %v865_v42 }
 0x312   : > { %v1590_v43 = vpop.eup %1589 }
 0x313   : > { %v867_v44 = vmul.f32 0.6931472, %v1590_v43 }
 0x315   : > { %v868_v45 = vadd.f32 %v867_v44, %v860_v28 }
 0x317   : > { %v879_v52 = vsub.f32 %v868_v45, %v875_v46 }
 0x319   : > { %v880_v56 = vmul.f32 %v1046_v48, %v879_v52 }
 0x31b   : > { %882 = vrot.lane.b32.xlu0 %v880_v56, %s1728_s30 }
 0x38d   : > { %v883_v57 = vpop.permute.xlu0 %882 }
 0x38e   : > { %v886_v58 = vsel %vm885_vm4, %v883_v57, 0.0 }
 0x38f   : > { %887 = vadd.xlane.f32.xlu1 %v886_v58 }
 0x390   : > { %1632 = shalt.err (!%p1629_p7)
}
 0x391   : > { %s1633_s20 = scalar_lea.hbm %s2181_s7, 128  ;;  %s1637_s26 = scalar_lea.hbm %s2254_s2, 256 }
 0x392   : > { %p1634_p8 = scmp.ne.s32.totalorder %s2181_s7, %s1633_s20  ;;  %p1638_p1 = scmp.lt.u32.totalorder %s2181_s7, %s2254_s2 }
 0x393   : > { %p1639_p0 = scmp.lt.u32.totalorder %s1637_s26, %s1633_s20  ;;  %p1641_p6 = scmp.lt.u32.totalorder %s1633_s20, %s2181_s7 }
 0x394   : > { %p1635_p11 = pnand %p1634_p8, %p2266_p9 }
 0x395   : > { %p1640_p5 = por %p1639_p0, %p1638_p1 }
 0x396   : > { %p1636_p13 = pneg %p1635_p11 }
 0x397   : > { %p1642_p10 = por %p1641_p6, %p1640_p5 }
 0x399   : > { %p1643_p12 = pnand %p1642_p10, %p1636_p13 }
 0x39b   : > { %1646 = shalt.err (!%p1643_p12)
}
 0x39c   : > { %1524 = dma.vmem_to_hbm [thread:$0]  (%p2266_p9), %s918_s8, 128, %s2181_s7, %s899_s9  }
 0x39d   : > { %s187_s5 = scalar_lea.vmem [#allocation6], %s1039_s28  ;;  %s2211_s9 = scalar_lea.hbm %s2255_s3, %s1049_s4 }
 0x39e   : > { %s930_s6 = sshll.u32 %s187_s5, 4  ;;  %s904_s11 = scalar_lea.sflag [#allocation7], %s2164_s27  ;;  %s2204_s6 = int_to_ptr.vmem [resolvable:$true] %s930_s6 }
 0x39f   : > { %s1647_s17 = scalar_lea.vmem %s2204_s6, 128  ;;  %s1730_s28 = smov [#allocation6]  }
 0x3a0   : > { %p1648_p2 = scmp.ne.s32.totalorder %s2204_s6, %s1647_s17  ;;  %s1651_s19 = sshll.u32 %s1730_s28, 4  ;;  %s1652_s19 = int_to_ptr.vmem [resolvable:$false] %s1651_s19 }
 0x3a1   : > { %s1653_s20 = scalar_lea.vmem %s1652_s19, 256  ;;  %p1654_p7 = scmp.lt.s32.totalorder %s2204_s6, %s1652_s19 }
 0x3a2   : > { %p1649_p3 = pnand %p1648_p2, %p2266_p9  ;;  %p1655_p8 = scmp.lt.s32.totalorder %s1653_s20, %s1647_s17 }
 0x3a4   : > { %p1650_p4 = pneg %p1649_p3  ;;  %p1656_p11 = por %p1655_p8, %p1654_p7 }
 0x3a6   : > { %p1657_p13 = pnand %p1656_p11, %p1650_p4 }
 0x41c   : > { %v888_v2 = vpop.xlane.xlu1 %887 }
 0x41d   : > { %v889_v53 = vrot.slane %v888_v2, 4 }
 0x41f   : > { %v890_v6 = vadd.f32 %v889_v53, %v888_v2 }
 0x421   : > { %v891_v9 = vrot.slane %v890_v6, 2 }
 0x423   : > { %v892_v13 = vadd.f32 %v891_v9, %v890_v6 }
 0x425   : > { %v893_v14 = vrot.slane %v892_v13, 1 }
 0x427   : > { %v894_v31 = vadd.f32 %v893_v14, %v892_v13 }
 0x429   : > { %1518 = vpush %v894_v31 }
 0x45a   : > { %s1519_s10 = spop %1518 }
 0x45b   : > { %v896_v51 = vstv %s1519_s10 }
 0x45c   : > { %897 = vst [vmem:[%s187_s5] sm:$0xff] %v896_v51 }
 0x45d   : > { %1660 = shalt.err (!%p1657_p13)
}
 0x45e   : > { %s1661_s16 = scalar_lea.hbm %s2211_s9, 128  ;;  %s1665_s24 = scalar_lea.hbm %s2255_s3, 256 }
 0x45f   : > { %p1662_p1 = scmp.ne.s32.totalorder %s2211_s9, %s1661_s16  ;;  %p1666_p6 = scmp.lt.u32.totalorder %s2211_s9, %s2255_s3 }
 0x460   : > { %p1667_p10 = scmp.lt.u32.totalorder %s1665_s24, %s1661_s16  ;;  %p1669_p2 = scmp.lt.u32.totalorder %s1661_s16, %s2211_s9 }
 0x461   : > { %p1663_p0 = pnand %p1662_p1, %p2266_p9 }
 0x462   : > { %p1668_p12 = por %p1667_p10, %p1666_p6 }
 0x463   : > { %p1664_p5 = pneg %p1663_p0 }
 0x464   : > { %p1670_p3 = por %p1669_p2, %p1668_p12 }
 0x466   : > { %p1671_p4 = pnand %p1670_p3, %p1664_p5 }
 0x468   : > { %1674 = shalt.err (!%p1671_p4)
}
 0x469   : > { %1525 = dma.vmem_to_hbm [thread:$0]  (%p2266_p9), %s2204_s6, 128, %s2211_s9, %s904_s11  }
 0x46a PF: > { %p1541_p7 = scmp.ge.s32.totalorder %s1717_s15, 2  ;;  %s942_s29 = sand.u32 1, %s1705_s12  }
 0x46b   : > { %p2267_p8 = scmp.ne.s32.totalorder %s2260_s23, 0  ;;  %s943_s30 = scalar_lea.sflag [#allocation4], %s942_s29 }
 0x46d   : > { %p1533_p11 = pnand %p1541_p7, %p2267_p8 }
 0x46f   : > { %1696 = dma.done.wait (!%p1533_p11), %s943_s30, 128  }
 0x470   : > { %1698 = vsyncadd (!%p1533_p11), %s943_s30, 4294967168  ;;  %s952_s5 = scalar_lea.sflag [#allocation7], %s942_s29 }
 0x471   : > { %1700 = dma.done.wait (!%p1533_p11), %s952_s5, 128  }
 0x472   : > { %1702 = vsyncadd (!%p1533_p11), %s952_s5, 4294967168  ;;  %p18_p9 = scmp.ge.s32.totalorder %s1776_s18, 4   ;;  %s2268_s12 = smov %s1709_s13 }
 0x473   : > { %s2269_s13 = smov %s1713_s14  ;;  %s2270_s14 = smov %s1787_s21 }
 0x474   : > { %s2271_s15 = smov %s1776_s18  ;;  %20 = sbr.rel (!%p18_p9) target bundleno = 6 (0x6), region = 85 }
 0x47b   :  { %957 = vsyncpa [#allocation3], 1 }
 0x47c   :  { %959 = vsyncpa [#allocation3 + $0x1], 1 }
 0x47d   :  { %960 = vsyncpa [#allocation4], 1 }
 0x47e   :  { %962 = vsyncpa [#allocation4 + $0x1], 1 }
 0x47f   :  { %963 = vsyncpa [#allocation7], 1 }
 0x480   :  { %965 = vsyncpa [#allocation7 + $0x1], 1 }

</bundles_post_ra>
